<compile_context>
chip_gen: v7x
topology: tpu7x:2x2x1
jax: 0.10.0
libtpu: 0.0.40
codegen_flags: <defaults>
</compile_context>

<pallas_src>
import jax
import jax.numpy as jnp
from jax.experimental import pallas as pl
from jax.experimental.pallas import tpu as pltpu

LANE = 128


# ----------------------------- Pallas kernel ------------------------------- #

def _fused_surrogate_kernel(adj_ref, x_ref, w1_ref, b1_ref,
                            w2_ref, b2_ref, wp_ref, bp_ref, o_ref):
    """Fused forward: two GraphSAGE layers + embedding projection.

    adj_ref : (N, N)          row-normalized adjacency (bf16)
    x_ref   : (N, Fin)        node features (bf16)
    w1_ref  : (Fin, 2*Hp)     [W1_self | W1_neigh], lane-padded (bf16)
    w2_ref  : (Hp, 2*Hp)      [W2_self | W2_neigh], lane-padded (bf16)
    b*_ref  : (1, Hp)         lane-padded biases (f32)
    wp_ref  : (Hp, OUT_PAD)   lane-padded projection weight (bf16)
    bp_ref  : (1, OUT_PAD)    lane-padded projection bias (f32)
    o_ref   : (N, OUT_PAD)    lane-dense output slab (f32)
    """
    f32 = jnp.float32
    bf16 = jnp.bfloat16
    hp = w2_ref.shape[0]  # padded hidden width (multiple of 128)

    a = adj_ref[...]      # (N, N)   bf16
    x = x_ref[...]        # (N, Fin) bf16

    # ---- layer 1: h1 = relu(x @ Ws1 + A @ (x @ Wn1) + b1) ----
    xw1 = jnp.dot(x, w1_ref[...], preferred_element_type=f32)        # (N, 2Hp)
    self1 = xw1[:, :hp]                                               # (N, Hp)
    neigh1 = jnp.dot(a, xw1[:, hp:].astype(bf16),
                     preferred_element_type=f32)                      # K = N
    h1 = jnp.maximum(self1 + neigh1 + b1_ref[...], 0.0)               # f32

    # ---- layer 2: h2 = relu(h1 @ Ws2 + A @ (h1 @ Wn2) + b2) ----
    h1b = h1.astype(bf16)
    xw2 = jnp.dot(h1b, w2_ref[...], preferred_element_type=f32)       # (N, 2Hp)
    self2 = xw2[:, :hp]
    neigh2 = jnp.dot(a, xw2[:, hp:].astype(bf16),
                     preferred_element_type=f32)                      # K = N
    h2 = jnp.maximum(self2 + neigh2 + b2_ref[...], 0.0)               # f32

    # ---- embedding projection into a lane-dense padded slab ----
    o_ref[...] = (jnp.dot(h2.astype(bf16), wp_ref[...],
                          preferred_element_type=f32) + bp_ref[...])


# ------------------------------ JAX wrapper -------------------------------- #

def _round_up(v, m):
    return max(m, ((v + m - 1) // m) * m)


def surrogate_embedding_forward(params, x, adj_norm):
    """Forward of SurrogateEmbeddingModel: base GNN embeddings -> projection."""
    n, fin = x.shape
    h = params["w1_self"].shape[1]
    out_dim = params["wp"].shape[1]
    hp = _round_up(h, LANE)
    out_pad = _round_up(out_dim, LANE)

    bf16 = jnp.bfloat16
    f32 = jnp.float32

    def pad_cols(w, total):
        return jnp.pad(w, ((0, 0), (0, total - w.shape[1])))

    def pad_rows(w, total):
        return jnp.pad(w, ((0, total - w.shape[0]), (0, 0)))

    adj_b = adj_norm.astype(bf16)
    x_b = x.astype(bf16)

    # Concatenated, lane-padded layer weights: [W_self | W_neigh] -> (in, 2*Hp)
    w1cat = jnp.concatenate([pad_cols(params["w1_self"], hp),
                             pad_cols(params["w1_neigh"], hp)],
                            axis=1).astype(bf16)                       # (fin, 2Hp)
    w2cat = jnp.concatenate(
        [pad_cols(pad_rows(params["w2_self"], hp), hp),
         pad_cols(pad_rows(params["w2_neigh"], hp), hp)],
        axis=1).astype(bf16)                                           # (Hp, 2Hp)
    b1p = pad_cols(params["b1"], hp).astype(f32)                       # (1, Hp)
    b2p = pad_cols(params["b2"], hp).astype(f32)                       # (1, Hp)

    # Lane-padded projection weight/bias for a dense 128-wide output slab.
    wpp = pad_cols(pad_rows(params["wp"], hp), out_pad).astype(bf16)   # (Hp, OUTP)
    bpp = pad_cols(params["bp"], out_pad).astype(f32)                  # (1, OUTP)

    vmem = pl.BlockSpec(memory_space=pltpu.VMEM)
    out_padded = pl.pallas_call(
        _fused_surrogate_kernel,
        out_shape=jax.ShapeDtypeStruct((n, out_pad), jnp.float32),
        in_specs=[vmem] * 8,
        out_specs=vmem,
    )(adj_b, x_b, w1cat, b1p, w2cat, b2p, wpp, bpp)

    # TODO(synk): at production N, pack 8 output rows per 128-lane row inside
    # the kernel instead of slicing a padded f32 slab here.
    return out_padded[:, :out_dim]


# --------------------------- parameter construction ------------------------ #

def _xavier_uniform(key, fan_in, fan_out):
    bound = (6.0 / (fan_in + fan_out)) ** 0.5
    # stored as [fan_in, fan_out] (pre-transposed nn.Linear weight)
    return jax.random.uniform(key, (fan_in, fan_out), jnp.float32,
                              minval=-bound, maxval=bound)


def init_params(key, in_feats, h_feats, output_dim):
    ks = jax.random.split(key, 5)
    return {
        "w1_self": _xavier_uniform(ks[0], in_feats, h_feats),
        "w1_neigh": _xavier_uniform(ks[1], in_feats, h_feats),
        "b1": jnp.zeros((1, h_feats), jnp.float32),
        "w2_self": _xavier_uniform(ks[2], h_feats, h_feats),
        "w2_neigh": _xavier_uniform(ks[3], h_feats, h_feats),
        "b2": jnp.zeros((1, h_feats), jnp.float32),
        # embedding_projection: xavier_uniform weight, zeros bias (as in __init__)
        "wp": _xavier_uniform(ks[4], h_feats, output_dim),
        "bp": jnp.zeros((1, output_dim), jnp.float32),
    }


def build_graph(key, n_nodes, in_feats, p_edge=0.2):
    """Random undirected graph; mean-over-neighbors adjacency (SAGEConv-style:
    no self-loop in the aggregation — the self term is the root weight)."""
    kx, ka = jax.random.split(key)
    x = jax.random.normal(kx, (n_nodes, in_feats), jnp.float32)
    a = jax.random.bernoulli(ka, p_edge, (n_nodes, n_nodes)).astype(jnp.float32)
    a = jnp.maximum(a, a.T)                                   # undirected
    a = a * (1.0 - jnp.eye(n_nodes, dtype=jnp.float32))       # drop self-loops
    deg = jnp.maximum(jnp.sum(a, axis=1, keepdims=True), 1.0)
    adj_norm = a / deg                                        # mean aggregation
    return x, adj_norm


# ---------------------------------- main ----------------------------------- #

if __name__ == "__main__":
    N = 64            # number of graph nodes
    IN_FEATS = 16     # input node feature dim
    H_FEATS = 32      # base_model.h_feats
    OUTPUT_DIM = 16   # target embedding dim (output_dim)

    key = jax.random.PRNGKey(0)
    k_graph, k_params = jax.random.split(key)

    x, adj_norm = build_graph(k_graph, N, IN_FEATS)
    params = init_params(k_params, IN_FEATS, H_FEATS, OUTPUT_DIM)

    out = surrogate_embedding_forward(params, x, adj_norm)
    out = jax.block_until_ready(out)
    assert out.shape == (N, OUTPUT_DIM)

    # ---- reference 1: exact f32 forward (dtype error included) ----
    def ref_f32(p, x, a):
        h1 = jnp.maximum(x @ p["w1_self"] + (a @ x) @ p["w1_neigh"] + p["b1"], 0.0)
        h2 = jnp.maximum(h1 @ p["w2_self"] + (a @ h1) @ p["w2_neigh"] + p["b2"], 0.0)
        return h2 @ p["wp"] + p["bp"]

    # ---- reference 2: bf16-matched (same cast points / reassociation as the
    # kernel), isolates kernel error from dtype error ----
    def ref_bf16(p, x, a):
        bf16, f32 = jnp.bfloat16, jnp.float32
        xb, ab = x.astype(bf16), a.astype(bf16)
        w1s, w1n = p["w1_self"].astype(bf16), p["w1_neigh"].astype(bf16)
        w2s, w2n = p["w2_self"].astype(bf16), p["w2_neigh"].astype(bf16)
        wp = p["wp"].astype(bf16)
        xw1n = jnp.dot(xb, w1n, preferred_element_type=f32)
        h1 = jnp.maximum(jnp.dot(xb, w1s, preferred_element_type=f32)
                         + jnp.dot(ab, xw1n.astype(bf16), preferred_element_type=f32)
                         + p["b1"], 0.0)
        h1b = h1.astype(bf16)
        xw2n = jnp.dot(h1b, w2n, preferred_element_type=f32)
        h2 = jnp.maximum(jnp.dot(h1b, w2s, preferred_element_type=f32)
                         + jnp.dot(ab, xw2n.astype(bf16), preferred_element_type=f32)
                         + p["b2"], 0.0)
        return jnp.dot(h2.astype(bf16), wp, preferred_element_type=f32) + p["bp"]

    r32 = ref_f32(params, x, adj_norm)
    rbf = ref_bf16(params, x, adj_norm)
    err32 = float(jnp.max(jnp.abs(out - r32)))
    errbf = float(jnp.max(jnp.abs(out - rbf)))
    assert jnp.allclose(out, rbf, atol=1e-2, rtol=1e-2), f"bf16-matched err {errbf}"
    assert jnp.allclose(out, r32, atol=1e-1, rtol=1e-1), f"f32 ref err {err32}"

    print("KERNEL_OK")
</pallas_src>

<mosaic_0001>
module attributes {stable_mosaic.version = 11 : i64} {
  func.func @_fused_surrogate_kernel(%arg0: memref<64x64xbf16, #tpu.memory_space<vmem>>, %arg1: memref<64x16xbf16, #tpu.memory_space<vmem>>, %arg2: memref<16x256xbf16, #tpu.memory_space<vmem>>, %arg3: memref<1x128xf32, #tpu.memory_space<vmem>>, %arg4: memref<128x256xbf16, #tpu.memory_space<vmem>>, %arg5: memref<1x128xf32, #tpu.memory_space<vmem>>, %arg6: memref<128x128xbf16, #tpu.memory_space<vmem>>, %arg7: memref<1x128xf32, #tpu.memory_space<vmem>>, %arg8: memref<64x128xf32, #tpu.memory_space<vmem>>) attributes {dimension_semantics = [], scalar_prefetch = 0 : i64, scratch_operands = 0 : i64, tpu.core_type = #tpu.core_type<tc>} {
    %c0 = arith.constant 0 : index
    %c0_0 = arith.constant 0 : index
    %0 = vector.load %arg0[%c0, %c0_0] : memref<64x64xbf16, #tpu.memory_space<vmem>>, vector<64x64xbf16>
    %c0_1 = arith.constant 0 : index
    %c0_2 = arith.constant 0 : index
    %1 = vector.load %arg1[%c0_1, %c0_2] : memref<64x16xbf16, #tpu.memory_space<vmem>>, vector<64x16xbf16>
    %c0_3 = arith.constant 0 : index
    %c0_4 = arith.constant 0 : index
    %2 = vector.load %arg2[%c0_3, %c0_4] : memref<16x256xbf16, #tpu.memory_space<vmem>>, vector<16x256xbf16>
    %cst = arith.constant dense<0.000000e+00> : vector<64x256xf32>
    %3 = tpu.matmul %1, %2, %cst {dimension_numbers = #tpu.dot_dimension_numbers<[1], [0], [0], [1], [0, 0, 1, 1], [], []>} : vector<64x16xbf16>, vector<16x256xbf16>, vector<64x256xf32> -> vector<64x256xf32>
    %4 = vector.extract_strided_slice %3 {offsets = [0, 0], sizes = [64, 128], strides = [1, 1]} : vector<64x256xf32> to vector<64x128xf32>
    %5 = vector.extract_strided_slice %3 {offsets = [0, 128], sizes = [64, 128], strides = [1, 1]} : vector<64x256xf32> to vector<64x128xf32>
    %6 = arith.truncf %5 : vector<64x128xf32> to vector<64x128xbf16>
    %cst_5 = arith.constant dense<0.000000e+00> : vector<64x128xf32>
    %7 = tpu.matmul %0, %6, %cst_5 {dimension_numbers = #tpu.dot_dimension_numbers<[1], [0], [0], [1], [0, 0, 1, 1], [], []>} : vector<64x64xbf16>, vector<64x128xbf16>, vector<64x128xf32> -> vector<64x128xf32>
    %8 = arith.addf %4, %7 : vector<64x128xf32>
    %c0_6 = arith.constant 0 : index
    %c0_7 = arith.constant 0 : index
    %9 = vector.load %arg3[%c0_6, %c0_7] : memref<1x128xf32, #tpu.memory_space<vmem>>, vector<1x128xf32>
    %10 = vector.broadcast %9 : vector<1x128xf32> to vector<64x128xf32>
    %11 = arith.addf %8, %10 : vector<64x128xf32>
    %cst_8 = arith.constant 0.000000e+00 : f32
    %12 = vector.broadcast %cst_8 : f32 to vector<64x128xf32>
    %13 = arith.maximumf %11, %12 : vector<64x128xf32>
    %14 = arith.truncf %13 : vector<64x128xf32> to vector<64x128xbf16>
    %c0_9 = arith.constant 0 : index
    %c0_10 = arith.constant 0 : index
    %15 = vector.load %arg4[%c0_9, %c0_10] : memref<128x256xbf16, #tpu.memory_space<vmem>>, vector<128x256xbf16>
    %cst_11 = arith.constant dense<0.000000e+00> : vector<64x256xf32>
    %16 = tpu.matmul %14, %15, %cst_11 {dimension_numbers = #tpu.dot_dimension_numbers<[1], [0], [0], [1], [0, 0, 1, 1], [], []>} : vector<64x128xbf16>, vector<128x256xbf16>, vector<64x256xf32> -> vector<64x256xf32>
    %17 = vector.extract_strided_slice %16 {offsets = [0, 0], sizes = [64, 128], strides = [1, 1]} : vector<64x256xf32> to vector<64x128xf32>
    %18 = vector.extract_strided_slice %16 {offsets = [0, 128], sizes = [64, 128], strides = [1, 1]} : vector<64x256xf32> to vector<64x128xf32>
    %19 = arith.truncf %18 : vector<64x128xf32> to vector<64x128xbf16>
    %cst_12 = arith.constant dense<0.000000e+00> : vector<64x128xf32>
    %20 = tpu.matmul %0, %19, %cst_12 {dimension_numbers = #tpu.dot_dimension_numbers<[1], [0], [0], [1], [0, 0, 1, 1], [], []>} : vector<64x64xbf16>, vector<64x128xbf16>, vector<64x128xf32> -> vector<64x128xf32>
    %21 = arith.addf %17, %20 : vector<64x128xf32>
    %c0_13 = arith.constant 0 : index
    %c0_14 = arith.constant 0 : index
    %22 = vector.load %arg5[%c0_13, %c0_14] : memref<1x128xf32, #tpu.memory_space<vmem>>, vector<1x128xf32>
    %23 = vector.broadcast %22 : vector<1x128xf32> to vector<64x128xf32>
    %24 = arith.addf %21, %23 : vector<64x128xf32>
    %cst_15 = arith.constant 0.000000e+00 : f32
    %25 = vector.broadcast %cst_15 : f32 to vector<64x128xf32>
    %26 = arith.maximumf %24, %25 : vector<64x128xf32>
    %27 = arith.truncf %26 : vector<64x128xf32> to vector<64x128xbf16>
    %c0_16 = arith.constant 0 : index
    %c0_17 = arith.constant 0 : index
    %28 = vector.load %arg6[%c0_16, %c0_17] : memref<128x128xbf16, #tpu.memory_space<vmem>>, vector<128x128xbf16>
    %cst_18 = arith.constant dense<0.000000e+00> : vector<64x128xf32>
    %29 = tpu.matmul %27, %28, %cst_18 {dimension_numbers = #tpu.dot_dimension_numbers<[1], [0], [0], [1], [0, 0, 1, 1], [], []>} : vector<64x128xbf16>, vector<128x128xbf16>, vector<64x128xf32> -> vector<64x128xf32>
    %c0_19 = arith.constant 0 : index
    %c0_20 = arith.constant 0 : index
    %30 = vector.load %arg7[%c0_19, %c0_20] : memref<1x128xf32, #tpu.memory_space<vmem>>, vector<1x128xf32>
    %31 = vector.broadcast %30 : vector<1x128xf32> to vector<64x128xf32>
    %32 = arith.addf %29, %31 : vector<64x128xf32>
    %c0_21 = arith.constant 0 : index
    %c0_22 = arith.constant 0 : index
    %33 = vector.load %arg8[%c0_21, %c0_22] : memref<64x128xf32, #tpu.memory_space<vmem>>, vector<64x128xf32>
    tpu.vector_store %arg8[%c0_21, %c0_22], %32 {strides = array<i32>} : memref<64x128xf32, #tpu.memory_space<vmem>>, vector<64x128xf32>,
    return
  }
}

</mosaic_0001>

<bundles_post_ra>
// kernel: tpu_custom_call.1
= control target key start
LH: loop header
LB: loop body
LE: loop exit
PB: predicated region body
PF: predicated region fallthrough
CT: control target
= control target key end

     0   :  { %13 = vsyncpa [#allocation3], 0  ;;  %s1261_s0 = inlined_call_operand.vmem [shape: bf16[64,64], index: 0, kind: input, shape index: {}]   ;;  %s1262_s1 = inlined_call_operand.vmem [shape: bf16[64,16], index: 1, kind: input, shape index: {}]   ;;  %s1263_s2 = inlined_call_operand.hbm [shape: bf16[16,256], index: 2, kind: input, shape index: {}]   ;;  %s1264_s3 = inlined_call_operand.vmem [shape: f32[1,128], index: 3, kind: input, shape index: {}]   ;;  %s1265_s4 = inlined_call_operand.hbm [shape: bf16[128,256], index: 4, kind: input, shape index: {}]   ;;  %s1266_s5 = inlined_call_operand.vmem [shape: f32[1,128], index: 5, kind: input, shape index: {}]   ;;  %s1267_s6 = inlined_call_operand.hbm [shape: bf16[128,128], index: 6, kind: input, shape index: {}]   ;;  %s1268_s7 = inlined_call_operand.vmem [shape: f32[1,128], index: 7, kind: input, shape index: {}]   ;;  %s1269_s8 = inlined_call_operand.hbm [shape: f32[64,128], index: 8, kind: output, shape index: {}]  }
   0x1   :  { %14 = vsyncpa [#allocation6], 0 }
   0x2   :  { %15 = vsyncpa [#allocation4], 0  ;;  %s1073_s27 = smov [#allocation5]   ;;  %s1074_s29 = smov [#allocation2]  }
   0x3   :  { %s39_s28 = sshll.u32 %s1073_s27, 4  ;;  %s25_s30 = sshll.u32 %s1074_s29, 4  ;;  %s40_s28 = int_to_ptr.vmem [resolvable:$true] %s39_s28  ;;  %s1127_s30 = int_to_ptr.vmem [resolvable:$true] %s25_s30 }
   0x4   :  { %s979_s11 = scalar_lea.hbm %s1265_s4, 2048 }
   0x5   :  { %p980_p0 = scmp.ne.s32.totalorder %s1265_s4, %s979_s11  ;;  %p983_p1 = scmp.lt.u32.totalorder %s979_s11, %s1265_s4 }
   0x7   :  { %p985_p2 = pnand %p983_p1, %p980_p0 }
   0x9   :  { %988 = shalt.err (!%p985_p2)
}
   0xa   :  { %s989_s16 = scalar_lea.vmem %s40_s28, 2048  ;;  %p994_p4 = scmp.lt.s32.totalorder %s40_s28, %s40_s28 }
   0xb   :  { %p990_p3 = scmp.ne.s32.totalorder %s40_s28, %s989_s16  ;;  %p995_p5 = scmp.lt.s32.totalorder %s989_s16, %s989_s16 }
   0xd   :  { %p996_p6 = por %p995_p5, %p994_p4 }
   0xf   :  { %p997_p7 = pnand %p996_p6, %p990_p3 }
  0x11   :  { %1000 = shalt.err (!%p997_p7)
}
  0x12   :  { %s1075_s17 = smov 128   ;;  %s1076_s18 = smov 8  }
  0x13   :  { %45 = dma.hbm_to_vmem [thread:$0]  %s1265_s4, 2048, %s40_s28, [#allocation6], %s1075_s17, %s1075_s17, %s1076_s18  }
  0x14   :  { %s1001_s23 = scalar_lea.hbm %s1263_s2, 256 }
  0x15   :  { %p1002_p8 = scmp.ne.s32.totalorder %s1263_s2, %s1001_s23  ;;  %p1005_p9 = scmp.lt.u32.totalorder %s1001_s23, %s1263_s2 }
  0x17   :  { %p1007_p10 = pnand %p1005_p9, %p1002_p8 }
  0x19   :  { %1010 = shalt.err (!%p1007_p10)
}
  0x1a   :  { %s1011_s29 = scalar_lea.vmem %s1127_s30, 256  ;;  %p1016_p12 = scmp.lt.s32.totalorder %s1127_s30, %s1127_s30 }
  0x1b   :  { %p1012_p11 = scmp.ne.s32.totalorder %s1127_s30, %s1011_s29  ;;  %p1017_p13 = scmp.lt.s32.totalorder %s1011_s29, %s1011_s29 }
  0x1d   :  { %p1018_p0 = por %p1017_p13, %p1016_p12 }
  0x1f   :  { %p1019_p1 = pnand %p1018_p0, %p1012_p11 }
  0x21   :  { %1022 = shalt.err (!%p1019_p1)
}
  0x22   :  { %31 = dma.hbm_to_vmem [thread:$0]  %s1263_s2, 256, %s1127_s30, [#allocation3], %s1075_s17, %s1075_s17, %s1076_s18  }
  0x23   :  { %s1077_s9 = smov [#allocation7]   ;;  %s1023_s13 = scalar_lea.hbm %s1267_s6, 1024 }
  0x24   :  { %s53_s10 = sshll.u32 %s1077_s9, 4  ;;  %p1024_p2 = scmp.ne.s32.totalorder %s1267_s6, %s1023_s13  ;;  %s54_s10 = int_to_ptr.vmem [resolvable:$true] %s53_s10 }
  0x25   :  { %p1027_p3 = scmp.lt.u32.totalorder %s1023_s13, %s1267_s6 }
  0x27   :  { %p1029_p4 = pnand %p1027_p3, %p1024_p2 }
  0x29   :  { %1032 = shalt.err (!%p1029_p4)
}
  0x2a   :  { %s1033_s20 = scalar_lea.vmem %s54_s10, 1024  ;;  %p1038_p6 = scmp.lt.s32.totalorder %s54_s10, %s54_s10 }
  0x2b   :  { %p1034_p5 = scmp.ne.s32.totalorder %s54_s10, %s1033_s20  ;;  %p1039_p7 = scmp.lt.s32.totalorder %s1033_s20, %s1033_s20 }
  0x2d   :  { %p1040_p8 = por %p1039_p7, %p1038_p6 }
  0x2f   :  { %p1041_p9 = pnand %p1040_p8, %p1034_p5 }
  0x31   :  { %1044 = shalt.err (!%p1041_p9)
}
  0x32   :  { %s1078_s2 = smov 64   ;;  %s1079_s30 = smov 4  }
  0x33   :  { %59 = dma.hbm_to_vmem [thread:$0]  %s1267_s6, 1024, %s54_s10, [#allocation6], %s1078_s2, %s1078_s2, %s1079_s30  }
  0x34   :  { %1067 = dma.done.wait [#allocation3], 256  }
  0x35   :  { %1068 = vsyncadd [#allocation3], 4294967040 }
  0x36   :  { %1069 = dma.done.wait [#allocation6], 3072  }
  0x37   :  { %1070 = vsyncadd [#allocation6], 4294964224  ;;  %v1080_v0 = vmov 0   ;;  %v936_v1 = vld [vmem:[#allocation2 + $0x4] ss:$8 sps:$4 sm:$0xff]   ;;  %vm120_vm0 = vcmask 130048  }
  0x38   :  { %165 = vmatprep.mubr.bf16.mxu0 %v1080_v0  ;;  %v938_v2 = vld [vmem:[#allocation2] ss:$8 sps:$4 sm:$0xff]   ;;  %133 = vmatprep.subr.bf16.mxu0 %v936_v1  ;;  %v941_v5 = vld [vmem:[%s1262_s1 + $0x10] sm:$0xff]   ;;  %v942_v6 = vld [vmem:[%s1262_s1 + $0x18] sm:$0xff]   ;;  %vm230_vm1 = vcmask 523264   ;;  %s1081_s20 = smov [#allocation8]  }
  0x39   :  { %v939_v3 = vld [vmem:[%s1262_s1] sm:$0xff]   ;;  %134 = vmatpush1.bf16.msra.mxu0 %v938_v2  ;;  %v940_v4 = vld [vmem:[%s1262_s1 + $0x8] sm:$0xff]   ;;  %v947_v8 = vld [vmem:[#allocation5] ss:$8 sps:$4 sm:$0xff]   ;;  %s765_s2 = sshll.u32 %s1081_s20, 4  ;;  %s766_s2 = int_to_ptr.vmem [resolvable:$true] %s765_s2 }
  0x3a   :  { %v943_v7 = vld [vmem:[%s1261_s0] sm:$0xff]   ;;  %v949_v9 = vld [vmem:[#allocation5 + $0x4] ss:$8 sps:$4 sm:$0xff]   ;;  %v953_v13 = vld [vmem:[#allocation5 + $0x20] ss:$8 sps:$4 sm:$0xff]   ;;  %p1050_p11 = scmp.lt.s32.totalorder %s766_s2, %s766_s2 }
  0x3b   :  { %863 = vmatprep.mubr.msk.bf16.mxu1 %vm230_vm1, %v943_v7  ;;  %v952_v10 = vld [vmem:[#allocation5 + $0x14] ss:$8 sps:$4 sm:$0xff]   ;;  %439 = vmatprep.subr.bf16.mxu0 %v949_v9  ;;  %v950_v11 = vld [vmem:[#allocation5 + $0x10] ss:$8 sps:$4 sm:$0xff]   ;;  %v955_v12 = vld [vmem:[#allocation5 + $0x24] ss:$8 sps:$4 sm:$0xff]  }
  0x3c   :  { %784 = vmatmul.mubr.msk.bf16.vlgmr.msra.gmra.mrb[0].mxu0 %vm120_vm0, %v939_v3  ;;  %v958_v14 = vld [vmem:[#allocation5 + $0x34] ss:$8 sps:$4 sm:$0xff]   ;;  %v956_v15 = vld [vmem:[#allocation5 + $0x30] ss:$8 sps:$4 sm:$0xff]   ;;  %v961_v16 = vld [vmem:[#allocation5 + $0x44] ss:$8 sps:$4 sm:$0xff]  }
  0x3d   :  { %175 = vmatprep.mubr.bf16.mxu0 %v1080_v0  ;;  %440 = vmatpush1.bf16.msra.mxu0 %v947_v8  ;;  %v959_v17 = vld [vmem:[#allocation5 + $0x40] ss:$8 sps:$4 sm:$0xff]   ;;  %v1200_v38 = vld [vmem:[%s1261_s0 + $0x8] sm:$0xff]   ;;  %v967_v43 = vld [vmem:[#allocation5 + $0x64] ss:$8 sps:$4 sm:$0xff]  }
  0x3e   :  { %441 = vmatprep.subr.bf16.mxu0 %v952_v10  ;;  %v1205_v39 = vld [vmem:[%s1261_s0 + $0x10] sm:$0xff]   ;;  %v1214_v40 = vld [vmem:[%s1261_s0 + $0x18] sm:$0xff]   ;;  %v964_v41 = vld [vmem:[#allocation5 + $0x54] ss:$8 sps:$4 sm:$0xff]  }
  0x3f   :  { %v962_v42 = vld [vmem:[#allocation5 + $0x50] ss:$8 sps:$4 sm:$0xff]   ;;  %v965_v44 = vld [vmem:[#allocation5 + $0x60] ss:$8 sps:$4 sm:$0xff]   ;;  %v970_v45 = vld [vmem:[#allocation5 + $0x74] ss:$8 sps:$4 sm:$0xff]  }
  0x40   :  { %v968_v46 = vld [vmem:[#allocation5 + $0x70] ss:$8 sps:$4 sm:$0xff]  }
  0x41   :  { %442 = vmatpush1.bf16.msra.mxu0 %v950_v11  ;;  %v796_v48 = vld [vmem:[%s1264_s3] ss:$0 sm:$0xff] }
  0x42   :  { %443 = vmatprep.subr.bf16.mxu0 %v955_v12 }
  0x44   :  { %785 = vmatmul.mubr.msk.bf16.gmra.mrb[4].mxu0 %vm120_vm0, %v940_v4 }
  0x45   :  { %185 = vmatprep.mubr.bf16.mxu0 %v1080_v0  ;;  %444 = vmatpush1.bf16.msra.mxu0 %v953_v13 }
  0x46   :  { %445 = vmatprep.subr.bf16.mxu0 %v958_v14 }
  0x49   :  { %446 = vmatpush1.bf16.msra.mxu0 %v956_v15 }
  0x4a   :  { %447 = vmatprep.subr.bf16.mxu0 %v961_v16 }
  0x4c   :  { %786 = vmatmul.mubr.msk.bf16.gmra.mrb[8].mxu0 %vm120_vm0, %v941_v5 }
  0x4d   :  { %195 = vmatprep.mubr.bf16.mxu0 %v1080_v0  ;;  %448 = vmatpush1.bf16.msra.mxu0 %v959_v17 }
  0x4e   :  { %449 = vmatprep.subr.bf16.mxu0 %v964_v41 }
  0x51   :  { %450 = vmatpush1.bf16.msra.mxu0 %v962_v42 }
  0x52   :  { %451 = vmatprep.subr.bf16.mxu0 %v967_v43 }
  0x54   :  { %787 = vmatmul.mubr.msk.bf16.gmra.mrb[12].mxu0 %vm120_vm0, %v942_v6 }
  0x55   :  { %471 = vmatprep.mubr.bf16.mxu0 %v1080_v0  ;;  %452 = vmatpush1.bf16.msra.mxu0 %v965_v44 }
  0x56   :  { %453 = vmatprep.subr.bf16.mxu0 %v970_v45 }
  0x59   :  { %454 = vmatpush1.bf16.msra.mxu0 %v968_v46 }
 0x10f   :  { %v167_v18 = vpop.f32.mrb[0].mxu0 }
 0x110   :  { %v169_v19 = vpop.f32.mrb[1].mxu0 }
 0x111   :  { %v171_v20 = vpop.f32.mrb[2].mxu0 }
 0x112   :  { %v173_v21 = vpop.f32.mrb[3].mxu0 }
 0x113   :  { %v206_v22 = vpack.c.bf16 %v173_v21, %v169_v19  ;;  %v971_v21 = vld [vmem:[#allocation7] sm:$0xff]  }
 0x114   :  { %887 = vmatprep.subr.bf16.mxu0 %v971_v21 }
 0x115   :  { %855 = vmatprep.subr.bf16.mxu1 %v206_v22 }
 0x116   :  { %856 = vmatpush3.bf16.msra.mxu1 %v206_v22  ;;  %v972_v22 = vld [vmem:[#allocation7 + $0x8] sm:$0xff]  }
 0x117   :  { %v177_v23 = vpop.f32.mrb[4].mxu0 }
 0x118   :  { %v179_v24 = vpop.f32.mrb[5].mxu0 }
 0x119   :  { %v181_v25 = vpop.f32.mrb[6].mxu0 }
 0x11a   :  { %v183_v26 = vpop.f32.mrb[7].mxu0 }
 0x11b   :  { %v207_v27 = vpack.c.bf16 %v183_v26, %v179_v24  ;;  %v974_v24 = vld [vmem:[#allocation7 + $0x18] sm:$0xff]  }
 0x11d   :  { %857 = vmatprep.subr.bf16.mxu1 %v207_v27 }
 0x11e   :  { %858 = vmatpush3.bf16.msra.mxu1 %v207_v27 }
 0x11f   :  { %v187_v28 = vpop.f32.mrb[8].mxu0 }
 0x120   :  { %v189_v29 = vpop.f32.mrb[9].mxu0 }
 0x121   :  { %v191_v30 = vpop.f32.mrb[10].mxu0 }
 0x122   :  { %v193_v31 = vpop.f32.mrb[11].mxu0 }
 0x123   :  { %v208_v32 = vpack.c.bf16 %v193_v31, %v189_v29 }
 0x125   :  { %859 = vmatprep.subr.bf16.mxu1 %v208_v32 }
 0x126   :  { %860 = vmatpush3.bf16.msra.mxu1 %v208_v32 }
 0x127   :  { %v197_v33 = vpop.f32.mrb[12].mxu0 }
 0x128   :  { %v199_v34 = vpop.f32.mrb[13].mxu0 }
 0x129   :  { %v201_v35 = vpop.f32.mrb[14].mxu0 }
 0x12a   :  { %v203_v36 = vpop.f32.mrb[15].mxu0 }
 0x12b   :  { %v209_v37 = vpack.c.bf16 %v203_v36, %v199_v34 }
 0x12d   :  { %861 = vmatprep.subr.bf16.mxu1 %v209_v37 }
 0x12e   :  { %862 = vmatpush3.bf16.msra.mxu1 %v209_v37 }
 0x131   :  { %864 = vmatmul.mubr.msk.bf16.vlgmr.msra.gmra.mrb[0].mxu1 %vm230_vm1, %v1200_v38 }
 0x132   :  { %867 = vmatprep.mubr.msk.bf16.mxu1 %vm230_vm1, %v1205_v39 }
 0x139   :  { %868 = vmatmul.mubr.msk.bf16.gmra.mrb[4].mxu1 %vm230_vm1, %v1214_v40 }
 0x13a   :  { %879 = vmatprep.mubr.msk.bf16.mxu1 %vm230_vm1, %v943_v7 }
 0x204   :  { %v865_v47 = vpop.f32.mrb[0].mxu1 }
 0x205   :  { %v310_v49 = vadd.f32 %v865_v47, %v177_v23  ;;  %v277_v50 = vpop.f32.mrb[1].mxu1  ;;  %v973_v23 = vld [vmem:[#allocation7 + $0x10] sm:$0xff]  }
 0x206   :  { %v308_v51 = vadd.f32 %v277_v50, %v167_v18  ;;  %v866_v52 = vpop.f32.mrb[2].mxu1 }
 0x207   :  { %v325_v53 = vadd.f32 %v796_v48, %v310_v49  ;;  %v311_v54 = vadd.f32 %v866_v52, %v181_v25  ;;  %v280_v55 = vpop.f32.mrb[3].mxu1  ;;  %v975_v25 = vld [vmem:[#allocation7 + $0x20] sm:$0xff]   ;;  %v817_v49 = vld [vmem:[%s1266_s5] ss:$0 sm:$0xff] }
 0x208   :  { %v323_v56 = vadd.f32 %v796_v48, %v308_v51  ;;  %v309_v57 = vadd.f32 %v280_v55, %v171_v20 }
 0x209   :  { %v326_v58 = vadd.f32 %v796_v48, %v311_v54  ;;  %v333_v60 = vmax.f32 %v325_v53, 0.0 }
 0x20a   :  { %v324_v59 = vadd.f32 %v796_v48, %v309_v57  ;;  %v331_v62 = vmax.f32 %v323_v56, 0.0 }
 0x20b   :  { %v334_v61 = vmax.f32 %v326_v58, 0.0 }
 0x20c   :  { %v332_v63 = vmax.f32 %v324_v59, 0.0  ;;  %v869_v1 = vpop.f32.mrb[4].mxu1 }
 0x20d   :  { %v314_v2 = vadd.f32 %v869_v1, %v197_v33  ;;  %v293_v3 = vpop.f32.mrb[5].mxu1  ;;  %v340_v4 = vpack.c.bf16 %v334_v61, %v333_v60 }
 0x20e   :  { %v339_v5 = vpack.c.bf16 %v332_v63, %v331_v62  ;;  %v312_v6 = vadd.f32 %v293_v3, %v187_v28  ;;  %v870_v7 = vpop.f32.mrb[6].mxu1 }
 0x20f   :  { %v329_v8 = vadd.f32 %v796_v48, %v314_v2  ;;  %v315_v9 = vadd.f32 %v870_v7, %v201_v35  ;;  %v296_v10 = vpop.f32.mrb[7].mxu1 }
 0x210   :  { %v327_v11 = vadd.f32 %v796_v48, %v312_v6  ;;  %v313_v12 = vadd.f32 %v296_v10, %v191_v30  ;;  %472 = vmatmul.mubr.bf16.vlgmr.msra.gmra.mrb[16].mxu0 %v339_v5 }
 0x211   :  { %v330_v13 = vadd.f32 %v796_v48, %v315_v9  ;;  %481 = vmatprep.mubr.bf16.mxu0 %v1080_v0  ;;  %v337_v15 = vmax.f32 %v329_v8, 0.0  ;;  %888 = vmatpush3.bf16.msra.mxu0 %v971_v21 }
 0x212   :  { %v328_v14 = vadd.f32 %v796_v48, %v313_v12  ;;  %v335_v17 = vmax.f32 %v327_v11, 0.0  ;;  %889 = vmatprep.subr.bf16.mxu0 %v972_v22  ;;  %v976_v48 = vld [vmem:[#allocation7 + $0x28] sm:$0xff]  }
 0x213   :  { %v338_v16 = vmax.f32 %v330_v13, 0.0 }
 0x214   :  { %v336_v18 = vmax.f32 %v328_v14, 0.0 }
 0x215   :  { %v342_v19 = vpack.c.bf16 %v338_v16, %v337_v15  ;;  %890 = vmatpush3.bf16.msra.mxu0 %v972_v22 }
 0x216   :  { %v341_v20 = vpack.c.bf16 %v336_v18, %v335_v17  ;;  %891 = vmatprep.subr.bf16.mxu0 %v973_v23 }
 0x218   :  { %482 = vmatmul.mubr.bf16.gmra.mrb[20].mxu0 %v340_v4 }
 0x219   :  { %491 = vmatprep.mubr.bf16.mxu0 %v1080_v0  ;;  %892 = vmatpush3.bf16.msra.mxu0 %v973_v23 }
 0x21a   :  { %893 = vmatprep.subr.bf16.mxu0 %v974_v24 }
 0x21d   :  { %894 = vmatpush3.bf16.msra.mxu0 %v974_v24 }
 0x21e   :  { %895 = vmatprep.subr.bf16.mxu0 %v975_v25 }
 0x220   :  { %492 = vmatmul.mubr.bf16.gmra.mrb[24].mxu0 %v341_v20 }
 0x221   :  { %501 = vmatprep.mubr.bf16.mxu0 %v1080_v0  ;;  %896 = vmatpush3.bf16.msra.mxu0 %v975_v25 }
 0x222   :  { %897 = vmatprep.subr.bf16.mxu0 %v976_v48 }
 0x225   :  { %898 = vmatpush3.bf16.msra.mxu0 %v976_v48 }
 0x228   :  { %502 = vmatmul.mubr.bf16.gmra.mrb[28].mxu0 %v342_v19 }
 0x2e3   :  { %v473_v26 = vpop.f32.mrb[16].mxu0 }
 0x2e4   :  { %v475_v27 = vpop.f32.mrb[17].mxu0 }
 0x2e5   :  { %v1225_v28 = vpop.f32.mrb[18].mxu0 }
 0x2e6   :  { %v479_v0 = vpop.f32.mrb[19].mxu0 }
 0x2e7   :  { %v512_v29 = vpack.c.bf16 %v479_v0, %v475_v27 }
 0x2e9   :  { %871 = vmatprep.subr.bf16.mxu1 %v512_v29 }
 0x2ea   :  { %872 = vmatpush3.bf16.msra.mxu1 %v512_v29 }
 0x2eb   :  { %v483_v30 = vpop.f32.mrb[20].mxu0 }
 0x2ec   :  { %v485_v31 = vpop.f32.mrb[21].mxu0 }
 0x2ed   :  { %v487_v32 = vpop.f32.mrb[22].mxu0 }
 0x2ee   :  { %v489_v33 = vpop.f32.mrb[23].mxu0 }
 0x2ef   :  { %v513_v34 = vpack.c.bf16 %v489_v33, %v485_v31 }
 0x2f1   :  { %873 = vmatprep.subr.bf16.mxu1 %v513_v34 }
 0x2f2   :  { %874 = vmatpush3.bf16.msra.mxu1 %v513_v34 }
 0x2f3   :  { %v1227_v35 = vpop.f32.mrb[24].mxu0 }
 0x2f4   :  { %v495_v36 = vpop.f32.mrb[25].mxu0 }
 0x2f5   :  { %v1229_v37 = vpop.f32.mrb[26].mxu0 }
 0x2f6   :  { %v499_v41 = vpop.f32.mrb[27].mxu0 }
 0x2f7   :  { %v514_v42 = vpack.c.bf16 %v499_v41, %v495_v36 }
 0x2f9   :  { %875 = vmatprep.subr.bf16.mxu1 %v514_v42 }
 0x2fa   :  { %876 = vmatpush3.bf16.msra.mxu1 %v514_v42 }
 0x2fb   :  { %v503_v43 = vpop.f32.mrb[28].mxu0 }
 0x2fc   :  { %v505_v44 = vpop.f32.mrb[29].mxu0 }
 0x2fd   :  { %v507_v45 = vpop.f32.mrb[30].mxu0 }
 0x2fe   :  { %v509_v46 = vpop.f32.mrb[31].mxu0 }
 0x2ff   :  { %v515_v47 = vpack.c.bf16 %v509_v46, %v505_v44 }
 0x301   :  { %877 = vmatprep.subr.bf16.mxu1 %v515_v47 }
 0x302   :  { %878 = vmatpush3.bf16.msra.mxu1 %v515_v47 }
 0x303   :  { %911 = vmatprep.subr.bf16.mxu1 %v971_v21 }
 0x305   :  { %880 = vmatmul.mubr.msk.bf16.vlgmr.msra.gmra.mrb[8].mxu1 %vm230_vm1, %v1200_v38  ;;  %v977_v38 = vld [vmem:[#allocation7 + $0x30] sm:$0xff]  }
 0x306   :  { %883 = vmatprep.mubr.msk.bf16.mxu1 %vm230_vm1, %v1205_v39  ;;  %919 = vmatpush3.bf16.msra.mxu1 %v971_v21  ;;  %v978_v39 = vld [vmem:[#allocation7 + $0x38] sm:$0xff]  }
 0x307   :  { %912 = vmatprep.subr.bf16.mxu1 %v972_v22  ;;  %899 = vmatprep.subr.bf16.mxu0 %v977_v38 }
 0x308   :  { %900 = vmatpush3.bf16.msra.mxu0 %v977_v38 }
 0x309   :  { %901 = vmatprep.subr.bf16.mxu0 %v978_v39 }
 0x30a   :  { %920 = vmatpush3.bf16.msra.mxu1 %v972_v22  ;;  %v818_v22 = vld [vmem:[%s1268_s7] ss:$0 sm:$0xff]  ;;  %s1045_s7 = scalar_lea.vmem %s766_s2, 1024 }
 0x30b   :  { %913 = vmatprep.subr.bf16.mxu1 %v973_v23  ;;  %p1046_p10 = scmp.ne.s32.totalorder %s766_s2, %s1045_s7  ;;  %p1051_p12 = scmp.lt.s32.totalorder %s1045_s7, %s1045_s7 }
 0x30c   :  { %902 = vmatpush3.bf16.msra.mxu0 %v978_v39 }
 0x30d   :  { %884 = vmatmul.mubr.msk.bf16.gmra.mrb[12].mxu1 %vm230_vm1, %v1214_v40  ;;  %p1052_p13 = por %p1051_p12, %p1050_p11 }
 0x30e   :  { %921 = vmatpush3.bf16.msra.mxu1 %v973_v23 }
 0x30f   :  { %914 = vmatprep.subr.bf16.mxu1 %v974_v24  ;;  %p1053_p0 = pnand %p1052_p13, %p1046_p10 }
 0x312   :  { %922 = vmatpush3.bf16.msra.mxu1 %v974_v24 }
 0x313   :  { %915 = vmatprep.subr.bf16.mxu1 %v975_v25 }
 0x316   :  { %923 = vmatpush3.bf16.msra.mxu1 %v975_v25 }
 0x317   :  { %916 = vmatprep.subr.bf16.mxu1 %v976_v48 }
 0x31a   :  { %924 = vmatpush3.bf16.msra.mxu1 %v976_v48 }
 0x31b   :  { %917 = vmatprep.subr.bf16.mxu1 %v977_v38 }
 0x31e   :  { %925 = vmatpush3.bf16.msra.mxu1 %v977_v38 }
 0x31f   :  { %918 = vmatprep.subr.bf16.mxu1 %v978_v39 }
 0x322   :  { %926 = vmatpush3.bf16.msra.mxu1 %v978_v39 }
 0x3d8   :  { %v881_v40 = vpop.f32.mrb[8].mxu1 }
 0x3d9   :  { %v583_v50 = vadd.f32 %v881_v40, %v483_v30  ;;  %v550_v51 = vpop.f32.mrb[9].mxu1 }
 0x3da   :  { %v581_v52 = vadd.f32 %v550_v51, %v473_v26  ;;  %v882_v53 = vpop.f32.mrb[10].mxu1 }
 0x3db   :  { %v598_v54 = vadd.f32 %v817_v49, %v583_v50  ;;  %v584_v55 = vadd.f32 %v882_v53, %v487_v32  ;;  %v553_v56 = vpop.f32.mrb[11].mxu1 }
 0x3dc   :  { %v596_v57 = vadd.f32 %v817_v49, %v581_v52  ;;  %v582_v58 = vadd.f32 %v553_v56, %v1225_v28 }
 0x3dd   :  { %v599_v59 = vadd.f32 %v817_v49, %v584_v55  ;;  %v606_v61 = vmax.f32 %v598_v54, 0.0 }
 0x3de   :  { %v597_v60 = vadd.f32 %v817_v49, %v582_v58  ;;  %v604_v63 = vmax.f32 %v596_v57, 0.0 }
 0x3df   :  { %v607_v62 = vmax.f32 %v599_v59, 0.0 }
 0x3e0   :  { %v605_v1 = vmax.f32 %v597_v60, 0.0  ;;  %v885_v2 = vpop.f32.mrb[12].mxu1 }
 0x3e1   :  { %v613_v3 = vpack.c.bf16 %v607_v62, %v606_v61  ;;  %v587_v4 = vadd.f32 %v885_v2, %v503_v43  ;;  %v566_v5 = vpop.f32.mrb[13].mxu1 }
 0x3e2   :  { %v585_v6 = vadd.f32 %v566_v5, %v1227_v35  ;;  %v886_v7 = vpop.f32.mrb[14].mxu1  ;;  %v612_v8 = vpack.c.bf16 %v605_v1, %v604_v63 }
 0x3e3   :  { %v602_v9 = vadd.f32 %v817_v49, %v587_v4  ;;  %v588_v10 = vadd.f32 %v886_v7, %v507_v45  ;;  %v569_v11 = vpop.f32.mrb[15].mxu1 }
 0x3e4   :  { %v600_v12 = vadd.f32 %v817_v49, %v585_v6  ;;  %v586_v13 = vadd.f32 %v569_v11, %v1229_v37  ;;  %903 = vmatprep.mubr.bf16.mxu0 %v612_v8 }
 0x3e5   :  { %v603_v14 = vadd.f32 %v817_v49, %v588_v10  ;;  %904 = vmatmul.mubr.bf16.vlgmr.msra.gmra.mrb[32].mxu0 %v613_v3  ;;  %v610_v16 = vmax.f32 %v602_v9, 0.0 }
 0x3e6   :  { %v601_v15 = vadd.f32 %v817_v49, %v586_v13  ;;  %v608_v18 = vmax.f32 %v600_v12, 0.0 }
 0x3e7   :  { %v611_v17 = vmax.f32 %v603_v14, 0.0 }
 0x3e8   :  { %v609_v19 = vmax.f32 %v601_v15, 0.0 }
 0x3e9   :  { %v615_v20 = vpack.c.bf16 %v611_v17, %v610_v16 }
 0x3ea   :  { %v614_v21 = vpack.c.bf16 %v609_v19, %v608_v18 }
 0x3ec   :  { %907 = vmatprep.mubr.bf16.mxu1 %v614_v21 }
 0x3ed   :  { %908 = vmatmul.mubr.bf16.vlgmr.msra.gmra.mrb[16].mxu1 %v615_v20 }
 0x4b8   :  { %v905_v23 = vpop.f32.mrb[32].mxu0 }
 0x4b9   :  { %v730_v24 = vadd.f32 %v905_v23, %v818_v22  ;;  %v721_v25 = vpop.f32.mrb[33].mxu0 }
 0x4ba   :  { %v722_v26 = vadd.f32 %v818_v22, %v721_v25  ;;  %v906_v27 = vpop.f32.mrb[34].mxu0 }
 0x4bb   :  { %754 = vst [vmem:[#allocation8 + $0x10] sm:$0xff] %v730_v24  ;;  %v733_v28 = vadd.f32 %v906_v27, %v818_v22  ;;  %v724_v0 = vpop.f32.mrb[35].mxu0 }
 0x4bc   :  { %752 = vst [vmem:[#allocation8] sm:$0xff] %v722_v26  ;;  %v725_v29 = vadd.f32 %v818_v22, %v724_v0 }
 0x4bd   :  { %755 = vst [vmem:[#allocation8 + $0x18] sm:$0xff] %v733_v28 }
 0x4be   :  { %753 = vst [vmem:[#allocation8 + $0x8] sm:$0xff] %v725_v29 }
 0x4c0   :  { %v909_v30 = vpop.f32.mrb[16].mxu1 }
 0x4c1   :  { %v746_v31 = vadd.f32 %v909_v30, %v818_v22  ;;  %v737_v32 = vpop.f32.mrb[17].mxu1 }
 0x4c2   :  { %v738_v33 = vadd.f32 %v818_v22, %v737_v32  ;;  %v910_v34 = vpop.f32.mrb[18].mxu1 }
 0x4c3   :  { %758 = vst [vmem:[#allocation8 + $0x30] sm:$0xff] %v746_v31  ;;  %v749_v35 = vadd.f32 %v910_v34, %v818_v22  ;;  %v740_v36 = vpop.f32.mrb[19].mxu1 }
 0x4c4   :  { %756 = vst [vmem:[#allocation8 + $0x20] sm:$0xff] %v738_v33  ;;  %v741_v37 = vadd.f32 %v818_v22, %v740_v36 }
 0x4c5   :  { %759 = vst [vmem:[#allocation8 + $0x38] sm:$0xff] %v749_v35 }
 0x4c6   :  { %757 = vst [vmem:[#allocation8 + $0x28] sm:$0xff] %v741_v37 }
 0x4c7   :  { %1056 = shalt.err (!%p1053_p0)
}
 0x4c8   :  { %s1057_s22 = scalar_lea.hbm %s1269_s8, 1024 }
 0x4c9   :  { %p1058_p1 = scmp.ne.s32.totalorder %s1269_s8, %s1057_s22  ;;  %p1061_p2 = scmp.lt.u32.totalorder %s1057_s22, %s1269_s8 }
 0x4cb   :  { %p1063_p3 = pnand %p1061_p2, %p1058_p1 }
 0x4cd   :  { %1066 = shalt.err (!%p1063_p3)
}
 0x4ce   :  { %771 = dma.vmem_to_hbm [thread:$0]  %s766_s2, 1024, %s1269_s8, [#allocation4], %s1075_s17, %s1075_s17, %s1076_s18  }
 0x4cf   :  { %1071 = dma.done.wait [#allocation4], 1024  }
 0x4d0   :  { %1072 = vsyncadd [#allocation4], 4294966272 }
 0x4d1   :  { %775 = vsyncpa [#allocation3], 1 }
 0x4d2   :  { %776 = vsyncpa [#allocation6], 1 }
 0x4d3   :  { %777 = vsyncpa [#allocation4], 1 }

</bundles_post_ra>
